<compile_context>
chip_gen: v5e
topology: v5e:2x2
jax: 0.10.0
libtpu: 0.0.40
codegen_flags: <defaults>
</compile_context>

<pallas_src>
import math

import jax
import jax.numpy as jnp
from jax.experimental import pallas as pl
from jax.experimental.pallas import tpu as pltpu


def _round_up(x, m):
    return (x + m - 1) // m * m


def _vmem_capacity_bytes():
    try:
        return int(pltpu.get_tpu_info().vmem_capacity_bytes)
    except Exception:
        # Conservative fallback (v7x per-TensorCore VMEM).
        return 64 * 1024 * 1024


def _lane_divisors(d_ff_p):
    """Divisors of d_ff_p that are multiples of 128, ascending."""
    units = d_ff_p // 128
    return sorted(d * 128 for d in range(1, units + 1) if units % d == 0)


def _working_set_bytes(tm, tf, d_model_p):
    bf16, f32 = 2, 4
    # double-buffered streamed bf16 tiles: x tile + w1 slab + w2 slab
    streamed = 2 * (tm * d_model_p + 2 * d_model_p * tf) * bf16
    # f32 output tile (double-buffered across the row axis)
    out_buf = 2 * tm * d_model_p * f32
    # GELU intermediate: f32 h plus its bf16 copy feeding the second matmul
    temps = tm * tf * (f32 + bf16)
    return streamed + out_buf + temps


def _ffn_kernel(x_ref, w1_ref, w2_ref, o_ref):
    k = pl.program_id(1)

    @pl.when(k == 0)
    def _():
        o_ref[...] = jnp.zeros_like(o_ref)

    # bf16 operands into the MXU, f32 accumulation.
    h = jnp.dot(x_ref[...], w1_ref[...], preferred_element_type=jnp.float32)

    # tanh-approximation GELU (f32), exactly as in the PyTorch module.
    c = jnp.float32(math.sqrt(2.0 / math.pi))
    h = 0.5 * h * (1.0 + jnp.tanh(c * (h + 0.044715 * (h * h * h))))

    # TODO(synk): torch.nn.Dropout is stochastic (torch RNG) in training mode;
    # eval/inference semantics (identity) are reproduced here, so no mask applied.

    # Output block index is constant in k -> o_ref is VMEM-resident across the
    # reduction axis; accumulate directly (f32), no scratch needed.
    o_ref[...] += jnp.dot(h.astype(jnp.bfloat16), w2_ref[...],
                          preferred_element_type=jnp.float32)


def feed_forward(x, w1, w2, *, row_tile=512, ff_tile=1024):
    """x: (batch, seq, d_model). w1: (d_model, d_ff). w2: (d_ff, d_model)."""
    batch, seq, d_model = x.shape
    d_ff = w1.shape[1]
    assert w1.shape == (d_model, d_ff) and w2.shape == (d_ff, d_model)

    M = batch * seq

    # Padding is mathematically a no-op: zero rows/cols contribute nothing and
    # gelu(0) == 0, so padded d_ff columns add zero to the accumulator.
    d_model_p = _round_up(d_model, 128)           # lane-dense output
    d_ff_p = _round_up(d_ff, 128)                 # pad only to 128, not to tf

    # --- tile selection -----------------------------------------------------
    vmem_cap = _vmem_capacity_bytes()
    budget = int(vmem_cap * 0.85)                 # headroom for compiler scratch

    # Row tile: multiple of 8, and at least 2 blocks along the "parallel" axis
    # so both v7x TensorCores get work on small-M shapes.
    tm = min(row_tile, _round_up(M, 8))
    if _round_up(M, tm) // tm < 2 and M > 8:
        tm = _round_up((M + 1) // 2, 8)

    # d_ff tile: the divisor of d_ff_p closest to (<=) ff_tile, so every k
    # block is full-size with no wasted MXU work / weight DMA.
    divs = _lane_divisors(d_ff_p)
    le = [d for d in divs if d <= ff_tile]
    tf = le[-1] if le else divs[0]

    # Shrink until the double-buffered working set fits VMEM.
    while _working_set_bytes(tm, tf, d_model_p) > budget:
        smaller_tf = [d for d in divs if d < tf]
        if smaller_tf:
            tf = smaller_tf[-1]
        elif tm > 8:
            tm = max(8, _round_up(tm // 2, 8))
        else:
            break

    m_p = _round_up(M, tm)
    grid = (m_p // tm, d_ff_p // tf)

    # --- pad + cast at the boundary (bf16 on the wire into the MXU) ---------
    x2d = jnp.pad(x.reshape(M, d_model),
                  ((0, m_p - M), (0, d_model_p - d_model))).astype(jnp.bfloat16)
    w1_p = jnp.pad(w1, ((0, d_model_p - d_model),
                        (0, d_ff_p - d_ff))).astype(jnp.bfloat16)
    w2_p = jnp.pad(w2, ((0, d_ff_p - d_ff),
                        (0, d_model_p - d_model))).astype(jnp.bfloat16)

    # --- advisory cost estimate (realistic bytes) ----------------------------
    row_tiles = m_p // tm
    bytes_accessed = int(
        m_p * d_model_p * 2                                   # x, bf16, once
        + row_tiles * 2 * d_model_p * d_ff_p * 2              # w1+w2, bf16, per row tile
        + m_p * d_model_p * 4)                                # output, f32, once
    cost = pl.CostEstimate(
        flops=4 * M * d_model * d_ff,
        transcendentals=M * d_ff,
        bytes_accessed=bytes_accessed,
    )

    working = _working_set_bytes(tm, tf, d_model_p)
    vmem_limit = int(min(max(int(working * 1.25), 32 * 1024 * 1024), budget))

    out2d = pl.pallas_call(
        _ffn_kernel,
        out_shape=jax.ShapeDtypeStruct((m_p, d_model_p), jnp.float32),
        grid_spec=pltpu.PrefetchScalarGridSpec(
            num_scalar_prefetch=0,
            grid=grid,
            in_specs=[
                pl.BlockSpec((tm, d_model_p), lambda i, k: (i, 0)),   # x rows
                pl.BlockSpec((d_model_p, tf), lambda i, k: (0, k)),   # w1 slab
                pl.BlockSpec((tf, d_model_p), lambda i, k: (k, 0)),   # w2 slab
            ],
            out_specs=pl.BlockSpec((tm, d_model_p), lambda i, k: (i, 0)),
        ),
        compiler_params=pltpu.CompilerParams(
            dimension_semantics=("parallel", "arbitrary"),
            vmem_limit_bytes=vmem_limit,
        ),
        cost_estimate=cost,
    )(x2d, w1_p, w2_p)

    out = out2d[:M, :d_model].reshape(batch, seq, d_model)
    return out.astype(x.dtype)


def _reference(x, w1, w2):
    h = jnp.matmul(x, w1)
    c = jnp.float32(math.sqrt(2.0 / math.pi))
    h = 0.5 * h * (1.0 + jnp.tanh(c * (h + 0.044715 * h ** 3)))
    return jnp.matmul(h, w2)


if __name__ == "__main__":
    # Small shapes consistent with the module's forward: (batch, seq, d_model)
    batch, seq, d_model, d_ff = 2, 8, 32, 64

    key = jax.random.PRNGKey(0)
    kx, k1, k2 = jax.random.split(key, 3)

    scale = jnp.float32(math.sqrt(2.0 / (d_model + d_ff)))
    x = jax.random.normal(kx, (batch, seq, d_model), dtype=jnp.float32)
    w1 = jax.random.normal(k1, (d_model, d_ff), dtype=jnp.float32) * scale
    w2 = jax.random.normal(k2, (d_ff, d_model), dtype=jnp.float32) * scale

    # jit so the pad + bf16 cast of the weights fuses with the kernel call and
    # is not re-materialized per invocation.
    ffn = jax.jit(feed_forward)

    out = ffn(x, w1, w2)
    out = jax.block_until_ready(out)

    ref = _reference(x, w1, w2)
    assert out.shape == (batch, seq, d_model)
    # bf16 MXU operands with f32 accumulation -> loosened tolerance vs f32 ref.
    assert jnp.allclose(out, ref, atol=5e-2, rtol=5e-2), "mismatch vs reference"

    print("KERNEL_OK")
</pallas_src>

<mosaic_0001>
module attributes {stable_mosaic.version = 11 : i64} {
  func.func @_ffn_kernel(%arg0: i32, %arg1: i32, %arg2: memref<8x128xbf16, #tpu.memory_space<vmem>>, %arg3: memref<128x128xbf16, #tpu.memory_space<vmem>>, %arg4: memref<128x128xbf16, #tpu.memory_space<vmem>>, %arg5: memref<8x128xf32, #tpu.memory_space<vmem>>) attributes {dimension_semantics = [#tpu.dimension_semantics<parallel>, #tpu.dimension_semantics<arbitrary>], iteration_bounds = array<i64: 2, 1>, scalar_prefetch = 0 : i64, scratch_operands = 0 : i64, tpu.core_type = #tpu.core_type<tc>, window_params = [{transform_indices = @transform_0, window_bounds = array<i64: 8, 128>}, {transform_indices = @transform_1, window_bounds = array<i64: 128, 128>}, {transform_indices = @transform_2, window_bounds = array<i64: 128, 128>}, {transform_indices = @transform_3, window_bounds = array<i64: 8, 128>}]} {
    %c0_i32 = arith.constant 0 : i32
    %0 = arith.cmpi eq, %arg1, %c0_i32 : i32
    %1 = arith.extui %0 : i1 to i32
    %c0_i32_0 = arith.constant 0 : i32
    %2 = arith.cmpi ne, %1, %c0_i32_0 : i32
    scf.if %2 {
      %cst_15 = arith.constant 0.000000e+00 : f32
      %25 = vector.broadcast %cst_15 : f32 to vector<8x128xf32>
      %c0_16 = arith.constant 0 : index
      %c0_17 = arith.constant 0 : index
      %26 = vector.load %arg5[%c0_16, %c0_17] : memref<8x128xf32, #tpu.memory_space<vmem>>, vector<8x128xf32>
      tpu.vector_store %arg5[%c0_16, %c0_17], %25 {strides = array<i32>} : memref<8x128xf32, #tpu.memory_space<vmem>>, vector<8x128xf32>,
    } else {
    }
    %c0 = arith.constant 0 : index
    %c0_1 = arith.constant 0 : index
    %3 = vector.load %arg2[%c0, %c0_1] : memref<8x128xbf16, #tpu.memory_space<vmem>>, vector<8x128xbf16>
    %c0_2 = arith.constant 0 : index
    %c0_3 = arith.constant 0 : index
    %4 = vector.load %arg3[%c0_2, %c0_3] : memref<128x128xbf16, #tpu.memory_space<vmem>>, vector<128x128xbf16>
    %cst = arith.constant dense<0.000000e+00> : vector<8x128xf32>
    %5 = tpu.matmul %3, %4, %cst {dimension_numbers = #tpu.dot_dimension_numbers<[1], [0], [0], [1], [0, 0, 1, 1], [], []>} : vector<8x128xbf16>, vector<128x128xbf16>, vector<8x128xf32> -> vector<8x128xf32>
    %cst_4 = arith.constant 5.000000e-01 : f32
    %6 = vector.broadcast %cst_4 : f32 to vector<8x128xf32>
    %7 = arith.mulf %6, %5 : vector<8x128xf32>
    %8 = arith.mulf %5, %5 : vector<8x128xf32>
    %9 = arith.mulf %8, %5 : vector<8x128xf32>
    %cst_5 = arith.constant 4.471500e-02 : f32
    %10 = vector.broadcast %cst_5 : f32 to vector<8x128xf32>
    %11 = arith.mulf %10, %9 : vector<8x128xf32>
    %12 = arith.addf %5, %11 : vector<8x128xf32>
    %cst_6 = arith.constant 0.797884583 : f32
    %13 = vector.broadcast %cst_6 : f32 to vector<8x128xf32>
    %14 = arith.mulf %13, %12 : vector<8x128xf32>
    %15 = math.tanh %14 : vector<8x128xf32>
    %cst_7 = arith.constant 1.000000e+00 : f32
    %16 = vector.broadcast %cst_7 : f32 to vector<8x128xf32>
    %17 = arith.addf %16, %15 : vector<8x128xf32>
    %18 = arith.mulf %7, %17 : vector<8x128xf32>
    %c0_8 = arith.constant 0 : index
    %c0_9 = arith.constant 0 : index
    %19 = vector.load %arg5[%c0_8, %c0_9] : memref<8x128xf32, #tpu.memory_space<vmem>>, vector<8x128xf32>
    %20 = arith.truncf %18 : vector<8x128xf32> to vector<8x128xbf16>
    %c0_10 = arith.constant 0 : index
    %c0_11 = arith.constant 0 : index
    %21 = vector.load %arg4[%c0_10, %c0_11] : memref<128x128xbf16, #tpu.memory_space<vmem>>, vector<128x128xbf16>
    %cst_12 = arith.constant dense<0.000000e+00> : vector<8x128xf32>
    %22 = tpu.matmul %20, %21, %cst_12 {dimension_numbers = #tpu.dot_dimension_numbers<[1], [0], [0], [1], [0, 0, 1, 1], [], []>} : vector<8x128xbf16>, vector<128x128xbf16>, vector<8x128xf32> -> vector<8x128xf32>
    %23 = arith.addf %19, %22 : vector<8x128xf32>
    %c0_13 = arith.constant 0 : index
    %c0_14 = arith.constant 0 : index
    %24 = vector.load %arg5[%c0_13, %c0_14] : memref<8x128xf32, #tpu.memory_space<vmem>>, vector<8x128xf32>
    tpu.vector_store %arg5[%c0_13, %c0_14], %23 {strides = array<i32>} : memref<8x128xf32, #tpu.memory_space<vmem>>, vector<8x128xf32>,
    return
  }
  func.func @transform_0(%arg0: i32, %arg1: i32) -> (i32, i32) {
    %c0_i32 = arith.constant 0 : i32
    %c0_i32_0 = arith.constant 0 : i32
    return %arg0, %c0_i32 : i32, i32
  }
  func.func @transform_1(%arg0: i32, %arg1: i32) -> (i32, i32) {
    %c0_i32 = arith.constant 0 : i32
    %c0_i32_0 = arith.constant 0 : i32
    return %c0_i32, %arg1 : i32, i32
  }
  func.func @transform_2(%arg0: i32, %arg1: i32) -> (i32, i32) {
    %c0_i32 = arith.constant 0 : i32
    %c0_i32_0 = arith.constant 0 : i32
    return %arg1, %c0_i32 : i32, i32
  }
  func.func @transform_3(%arg0: i32, %arg1: i32) -> (i32, i32) {
    %c0_i32 = arith.constant 0 : i32
    %c0_i32_0 = arith.constant 0 : i32
    return %arg0, %c0_i32 : i32, i32
  }
}

</mosaic_0001>

<bundles_post_ra>
// kernel: feed_forward.1
= control target key start
LH: loop header
LB: loop body
LE: loop exit
PB: predicated region body
PF: predicated region fallthrough
CT: control target
= control target key end

     0   :  { %s644_s12 = smov 0   ;;  %s646_s13 = smov 0   ;;  %s729_s0 = inlined_call_operand.vmem [shape: bf16[16,128], index: 0, kind: input, shape index: {}]   ;;  %s730_s1 = inlined_call_operand.vmem [shape: bf16[128,128], index: 1, kind: input, shape index: {}]   ;;  %s731_s2 = inlined_call_operand.vmem [shape: bf16[128,128], index: 2, kind: input, shape index: {}]   ;;  %s732_s3 = inlined_call_operand.vmem [shape: f32[16,128], index: 3, kind: output, shape index: {}]  }
   0x1   :  { %s648_s14 = smov 0  }
   0x2 LB: > { %s25_s15 = sadd.s32 1, %s618_s13  ;;  %p488_p0 = scmp.ge.s32.totalorder %s622_s14, 1  ;;  %s622_s14 = sphi %s648_s14, %s13_s14   ;;  %s618_s13 = sphi %s646_s13, %s734_s13   ;;  %s614_s12 = sphi %s644_s12, %s733_s12  }
   0x3   : > { %p27_p1 = scmp.ge.s32.totalorder %s25_s15, 2  ;;  %p168_p2 = scmp.lt.s32.totalorder %s622_s14, 3 }
   0x5   : > { %s736_s15 = smov (%p27_p1, %s25_s15), 0  ;;  %p169_p3 = pnand %p488_p0, %p168_p2 }
   0x6   : > { %p199_p4 = scmp.lt.s32.totalorder (!%p169_p3), %s614_s12, 1 }
   0x7   : > { %172 = sbr.rel (%p169_p3) target bundleno = 327 (0x147), region = 32 }
   0xc   : > { %v564_v0 = vld [vmem:[%s730_s1 + $0x38] sm:$0xff]  ;;  %v563_v1 = vld [vmem:[%s730_s1 + $0x30] sm:$0xff]  ;;  %v562_v4 = vld [vmem:[%s730_s1 + $0x28] sm:$0xff]  ;;  %s738_s12 = smov (!%p199_p4, %s614_s12), 1 }
   0xd   : > { %287 = vmatpush.bf16.msra.mxu0 %v564_v0  ;;  %v572_v2 = vld [vmem:[%s731_s2 + $0x38] sm:$0xff]  ;;  %v571_v3 = vld [vmem:[%s731_s2 + $0x30] sm:$0xff]  ;;  %v561_v5 = vld [vmem:[%s730_s1 + $0x20] sm:$0xff]  ;;  %s489_s7 = sshll.u32 %s738_s12, 2  ;;  %s490_s29 = sshll.u32 %s738_s12, 3 }
   0xe   : > { %375 = vmatpush.bf16.msra.mxu1 %v572_v2  ;;  %v560_v6 = vld [vmem:[%s730_s1 + $0x18] sm:$0xff]  ;;  %v559_v7 = vld [vmem:[%s730_s1 + $0x10] sm:$0xff]  ;;  %v558_v8 = vld [vmem:[%s730_s1 + $0x8] sm:$0xff]  ;;  %s202_s16 = scalar_lea.vmem %s729_s0, %s489_s7  ;;  %s216_s5 = scalar_lea.vmem %s732_s3, %s490_s29 }
   0xf   : > { %v557_v9 = vld [vmem:[%s730_s1] sm:$0xff]  ;;  %v570_v11 = vld [vmem:[%s731_s2 + $0x28] sm:$0xff]  ;;  %v568_v13 = vld [vmem:[%s731_s2 + $0x18] sm:$0xff] }
  0x10   : > { %v222_v10 = vld [vmem:[%s202_s16] sm:$0xf]  ;;  %v567_v14 = vld [vmem:[%s731_s2 + $0x10] sm:$0xff]  ;;  %v566_v15 = vld [vmem:[%s731_s2 + $0x8] sm:$0xff] }
  0x11   : > { %288 = vmatpush.bf16.msra.mxu0 %v563_v1  ;;  %v569_v12 = vld [vmem:[%s731_s2 + $0x20] sm:$0xff] }
  0x12   : > { %376 = vmatpush.bf16.msra.mxu1 %v571_v3  ;;  %v565_v16 = vld [vmem:[%s731_s2] sm:$0xff] }
  0x15   : > { %289 = vmatpush.bf16.msra.mxu0 %v562_v4 }
  0x16   : > { %377 = vmatpush.bf16.msra.mxu1 %v570_v11 }
  0x19   : > { %290 = vmatpush.bf16.msra.mxu0 %v561_v5 }
  0x1a   : > { %378 = vmatpush.bf16.msra.mxu1 %v569_v12 }
  0x1d   : > { %291 = vmatpush.bf16.msra.mxu0 %v560_v6 }
  0x1e   : > { %379 = vmatpush.bf16.msra.mxu1 %v568_v13 }
  0x21   : > { %292 = vmatpush.bf16.msra.mxu0 %v559_v7 }
  0x22   : > { %380 = vmatpush.bf16.msra.mxu1 %v567_v14 }
  0x25   : > { %293 = vmatpush.bf16.msra.mxu0 %v558_v8 }
  0x26   : > { %381 = vmatpush.bf16.msra.mxu1 %v566_v15 }
  0x29   : > { %294 = vmatpush.bf16.msra.mxu0 %v557_v9 }
  0x2a   : > { %382 = vmatpush.bf16.msra.mxu1 %v565_v16 }
  0x2c   : > { %295 = vmatmul.bf16.vlgmr.msra.gmra.mxu0 %v222_v10 }
  0xa9   : > { %v296_v17 = vpop.f32.mrf.mxu0 }
  0xaa   : > { %v301_v18 = vmul.f32 %v296_v17, %v296_v17  ;;  %v300_v25 = vmul.f32 0.5, %v296_v17 }
  0xac   : > { %v302_v19 = vmul.f32 %v301_v18, %v296_v17 }
  0xae   : > { %v303_v20 = vmul.f32 0.044715, %v302_v19 }
  0xb0   : > { %v304_v21 = vadd.f32 %v303_v20, %v296_v17 }
  0xb1   : > { %v298_v22 = vpop.f32.mrf.mxu0 }
  0xb2   : > { %v305_v23 = vmul.f32 0.7978846, %v304_v21 }
  0xb4   : > { %598 = vtanh.f32 %v305_v23 }
  0xba   : > { %v599_v24 = vpop.eup %598 }
  0xbb   : > { %v307_v26 = vadd.f32 1.0, %v599_v24 }
  0xbd   : > { %v308_v27 = vmul.f32 %v307_v26, %v300_v25 }
  0xbf   : > { %v310_v28 = vpack.c.bf16 %v308_v27, %v308_v27 }
  0xc1   : > { %383 = vmatmul.bf16.vlgmr.msra.gmra.mxu1 %v310_v28 }
 0x13e   : > { %v384_v29 = vpop.f32.mrf.mxu1 }
 0x13f   : > { %389 = vst [vmem:[%s216_s5] sm:$0xff] %v384_v29 }
 0x146   : > { %v386_v30 = vpop.f32.mrf.mxu1 }
 0x147 PF: > { %s13_s14 = sadd.s32 1, %s622_s14   ;;  %s733_s12 = smov %s618_s13 }
 0x148   : > { %p10_p5 = scmp.ge.s32.totalorder %s13_s14, 4   ;;  %s734_s13 = smov %s736_s15 }
 0x14a   :  { %12 = sbr.rel (!%p10_p5) target bundleno = 2 (0x2), region = 72 }

</bundles_post_ra>
